<compile_context>
chip_gen: v7x
topology: tpu7x:2x2x1
jax: 0.10.0
libtpu: 0.0.40
codegen_flags: <defaults>
</compile_context>

<pallas_src>
import functools

import jax
import jax.numpy as jnp
from jax.experimental import pallas as pl
from jax.experimental.pallas import tpu as pltpu

KSIZE = 10
OUT_DIM = 5      # hardcoded to 5 in the PyTorch forward()
OUT_PAD = 8      # FC output padded only to 8 lanes (sliced back to 5 outside)


# ----------------------------------------------------------------------------
# Fused forward kernel: all conv+ReLU layers, flatten, and the Linear.
# Activation layout inside the kernel: (C, bb * l_in); sample b occupies lane
# columns [b*l_in, (b+1)*l_in); only the first l_cur of them are valid.
# ----------------------------------------------------------------------------
def _fused_forward_kernel(*refs, ksize, channels, bb, l_in):
    n_conv = len(channels) - 1
    x_ref = refs[0]
    conv_refs = refs[1:1 + 2 * n_conv]
    fcw_ref = refs[1 + 2 * n_conv]
    fcb_ref = refs[2 + 2 * n_conv]
    o_ref = refs[3 + 2 * n_conv]

    act = x_ref[...].astype(jnp.float32)            # (1, bb * l_in)
    cur_w = bb * l_in                                # current full lane width
    l_cur = l_in                                     # valid length per sample

    for i in range(n_conv):
        c_in, c_out = channels[i], channels[i + 1]
        w = conv_refs[2 * i][...]                    # (c_out, ksize*c_in), k-major cols
        bias = conv_refs[2 * i + 1][...]             # (c_out, 1)
        new_w = cur_w - (ksize - 1)                  # full-width output (garbage tail)

        if c_in == 1:
            # Degenerate rank-1 taps: 10 broadcast FMAs on the VPU, shared
            # across the whole batch (one activation slice per tap, no
            # per-sample loop, weight broadcasts emitted exactly once).
            z = None
            for k in range(ksize):
                term = w[:, k:k + 1] * act[:, k:k + new_w]       # (c_out, new_w)
                z = term if z is None else z + term
        else:
            # K accumulating MXU matmuls over lane-shifted views of the full
            # activation row block; no im2col patch is materialized and the
            # tap windows are shared across the batch.
            z = None
            for k in range(ksize):
                wk = w[:, k * c_in:(k + 1) * c_in]               # (c_out, c_in) static slice
                ak = act[:, k:k + new_w]                         # (c_in, new_w)
                zk = jnp.dot(wk, ak, preferred_element_type=jnp.float32)
                z = zk if z is None else z + zk

        act = jnp.maximum(z + bias, 0.0)              # (c_out, new_w)
        cur_w = new_w
        l_cur = l_cur - (ksize - 1)
        # MaxPool1d(kernel_size=1, stride=1) == identity, folded away.
        # Lanes beyond each sample's l_cur now hold finite garbage; valid
        # lanes never read them (output l uses inputs l..l+9 <= l_cur_in-1).

    # Flatten exactly like PyTorch .view: feature index = c * L + l, per sample.
    # Valid block for sample b starts at lane b*l_in (fixed stride).
    c_last = channels[-1]
    rows = []
    for b in range(bb):
        base = b * l_in
        pieces = [act[c:c + 1, base: base + l_cur] for c in range(c_last)]
        rows.append(jnp.concatenate(pieces, axis=1))  # (1, c_last * l_cur)
    flat = rows[0] if bb == 1 else jnp.concatenate(rows, axis=0)   # (bb, F)

    y = jnp.dot(flat, fcw_ref[...], preferred_element_type=jnp.float32) + fcb_ref[...]
    o_ref[...] = y.astype(o_ref.dtype)                # (bb, OUT_PAD)


# ----------------------------------------------------------------------------
# Parameter init (PyTorch layout) and one-time kernel-layout preparation.
# ----------------------------------------------------------------------------
def init_params(key, units, input_len, ksize=KSIZE):
    """Deterministic params with the same shapes as the PyTorch module."""
    params = {"convs": []}
    c_in, l = 1, input_len
    for c_out in units:
        key, kw, kb = jax.random.split(key, 3)
        bound = 1.0 / (c_in * ksize) ** 0.5
        w = jax.random.uniform(kw, (c_out, c_in, ksize), jnp.float32, -bound, bound)
        b = jax.random.uniform(kb, (c_out,), jnp.float32, -bound, bound)
        params["convs"].append((w, b))
        c_in = c_out
        l = l - ksize + 1
    feat = units[-1] * l
    key, kw, kb = jax.random.split(key, 3)
    bound = 1.0 / feat ** 0.5
    # TODO(synk): PyTorch re-creates this Linear with fresh random weights on
    # every forward(); we use a fixed deterministic init instead.
    params["fc_w"] = jax.random.uniform(kw, (OUT_DIM, feat), jnp.float32, -bound, bound)
    params["fc_b"] = jax.random.uniform(kb, (OUT_DIM,), jnp.float32, -bound, bound)
    return params


def prepare_params(params):
    """One-time host-side layout transform into kernel-friendly form."""
    channels = (1,) + tuple(w.shape[0] for w, _ in params["convs"])
    prep = {"channels": channels, "convs": []}
    for w, b in params["convs"]:
        c_out, c_in, k = w.shape
        # (C_out, C_in, K) -> (C_out, K*C_in): column index = k*C_in + c, so the
        # kernel's per-tap slice [:, k*C_in:(k+1)*C_in] is exactly W[:, :, k].
        wm = jnp.transpose(w, (0, 2, 1)).reshape(c_out, k * c_in).astype(jnp.float32)
        prep["convs"].append((wm, b.reshape(c_out, 1).astype(jnp.float32)))
    fc_w, fc_b = params["fc_w"], params["fc_b"]
    feat = fc_w.shape[1]
    # Pre-transpose to (F, OUT) and pad OUT only to 8 (not 128): removes the
    # previous ~25x inflated FC-weight HBM transfer (review item 1).
    prep["fc_w"] = jnp.zeros((feat, OUT_PAD), jnp.float32).at[:, :OUT_DIM].set(fc_w.T)
    prep["fc_b"] = jnp.zeros((1, OUT_PAD), jnp.float32).at[0, :OUT_DIM].set(fc_b)
    return prep


# ----------------------------------------------------------------------------
# Forward wrapper: one pallas_call for the whole network.
# ----------------------------------------------------------------------------
def conv_neural_net_forward(prep, x, *, ksize=KSIZE, batch_block=None):
    """x: (B, 1, L_in) -> (B, 5), matching the PyTorch module forward.

    batch_block: samples per grid step (default: whole batch, grid=(1,)).
      On v7x (2 TensorCores) with a large batch, pass batch_block=batch//2 so
      the "parallel" grid axis shards across cores.  Keep bb=batch on
      v5e/v6e (1 TC) — shrinking bb only adds per-step overhead.
    """
    batch, c0, l_in = x.shape
    assert c0 == 1, "ConvNeuralNet expects a single input channel"
    bb = batch if batch_block is None else batch_block
    assert batch % bb == 0
    nb = batch // bb
    if nb > 1:
        # TPU BlockSpec tiling rules when blocks are not the full array:
        # output block (bb, 8) needs bb % 8 == 0; input block (1, bb*l_in)
        # needs bb*l_in % 128 == 0.
        assert bb % 8 == 0, "batch_block must be a multiple of 8 when nb > 1"
        assert (bb * l_in) % 128 == 0, "batch_block*l_in must be a multiple of 128"

    channels = prep["channels"]
    n_conv = len(channels) - 1
    l_cur = l_in
    for _ in range(n_conv):
        l_cur = l_cur - ksize + 1
    feat = channels[-1] * l_cur
    assert prep["fc_w"].shape == (feat, OUT_PAD)

    # Lane-concatenate the batch: (B, 1, L) -> (1, B*L), column index = b*L + l.
    x2 = x.reshape(1, batch * l_in).astype(jnp.float32)

    inputs = [x2]
    in_specs = [pl.BlockSpec((1, bb * l_in), lambda i: (0, i))]
    for wm, b2 in prep["convs"]:
        inputs += [wm, b2]
        in_specs += [
            pl.BlockSpec(wm.shape, lambda i: (0, 0)),
            pl.BlockSpec(b2.shape, lambda i: (0, 0)),
        ]
    inputs += [prep["fc_w"], prep["fc_b"]]
    in_specs += [
        pl.BlockSpec(prep["fc_w"].shape, lambda i: (0, 0)),
        pl.BlockSpec(prep["fc_b"].shape, lambda i: (0, 0)),
    ]

    kernel = functools.partial(
        _fused_forward_kernel, ksize=ksize, channels=channels, bb=bb, l_in=l_in)

    out_padded = pl.pallas_call(
        kernel,
        out_shape=jax.ShapeDtypeStruct((batch, OUT_PAD), jnp.float32),
        grid_spec=pltpu.PrefetchScalarGridSpec(
            num_scalar_prefetch=0,
            grid=(nb,),
            in_specs=in_specs,
            out_specs=pl.BlockSpec((bb, OUT_PAD), lambda i: (i, 0)),
        ),
        compiler_params=pltpu.CompilerParams(
            dimension_semantics=("parallel",)),
    )(*inputs)

    return out_padded[:, :OUT_DIM]


# ----------------------------------------------------------------------------
# Pure-JAX reference for a correctness check.
# ----------------------------------------------------------------------------
def reference_forward(params, x, ksize=KSIZE):
    out = x
    for w, b in params["convs"]:
        l_out = out.shape[2] - ksize + 1
        acc = jnp.zeros((out.shape[0], w.shape[0], l_out), jnp.float32)
        for k in range(ksize):
            acc = acc + jnp.einsum('oc,bcl->bol', w[:, :, k], out[:, :, k:k + l_out])
        out = jnp.maximum(acc + b[None, :, None], 0.0)
    flat = out.reshape(out.shape[0], -1)
    return flat @ params["fc_w"].T + params["fc_b"][None, :]


if __name__ == "__main__":
    # Small shapes consistent with the module: batch=2, 1 input channel,
    # sequence length 64, units=[8, 16] -> lengths 64 -> 55 -> 46, FC feat 736.
    units = [8, 16]
    batch, in_len = 2, 64

    key = jax.random.PRNGKey(0)
    key, kx = jax.random.split(key)
    x = jax.random.normal(kx, (batch, 1, in_len), jnp.float32)

    raw = init_params(key, units, in_len)
    prep = prepare_params(raw)

    out = conv_neural_net_forward(prep, x)
    out = jax.block_until_ready(out)
    assert out.shape == (batch, OUT_DIM), out.shape

    ref = jax.block_until_ready(reference_forward(raw, x))
    assert jnp.allclose(out, ref, rtol=1e-4, atol=1e-4), \
        float(jnp.max(jnp.abs(out - ref)))

    print("KERNEL_OK")
</pallas_src>

<mosaic_0001>
module attributes {stable_mosaic.version = 11 : i64} {
  func.func @_fused_forward_kernel(%arg0: i32, %arg1: memref<1x128xf32, #tpu.memory_space<vmem>>, %arg2: memref<8x10xf32, #tpu.memory_space<vmem>>, %arg3: memref<8x1xf32, #tpu.memory_space<vmem>>, %arg4: memref<16x80xf32, #tpu.memory_space<vmem>>, %arg5: memref<16x1xf32, #tpu.memory_space<vmem>>, %arg6: memref<736x8xf32, #tpu.memory_space<vmem>>, %arg7: memref<1x8xf32, #tpu.memory_space<vmem>>, %arg8: memref<2x8xf32, #tpu.memory_space<vmem>>) attributes {dimension_semantics = [#tpu.dimension_semantics<parallel>], iteration_bounds = array<i64: 1>, scalar_prefetch = 0 : i64, scratch_operands = 0 : i64, tpu.core_type = #tpu.core_type<tc>, window_params = [{transform_indices = @transform_0, window_bounds = array<i64: 1, 128>}, {pipeline_mode = #tpu.pipeline_mode<synchronous>, transform_indices = @transform_1, window_bounds = array<i64: 8, 10>}, {pipeline_mode = #tpu.pipeline_mode<synchronous>, transform_indices = @transform_2, window_bounds = array<i64: 8, 1>}, {pipeline_mode = #tpu.pipeline_mode<synchronous>, transform_indices = @transform_3, window_bounds = array<i64: 16, 80>}, {pipeline_mode = #tpu.pipeline_mode<synchronous>, transform_indices = @transform_4, window_bounds = array<i64: 16, 1>}, {pipeline_mode = #tpu.pipeline_mode<synchronous>, transform_indices = @transform_5, window_bounds = array<i64: 736, 8>}, {pipeline_mode = #tpu.pipeline_mode<synchronous>, transform_indices = @transform_6, window_bounds = array<i64: 1, 8>}, {transform_indices = @transform_7, window_bounds = array<i64: 2, 8>}]} {
    %c0 = arith.constant 0 : index
    %c0_0 = arith.constant 0 : index
    %0 = vector.load %arg1[%c0, %c0_0] : memref<1x128xf32, #tpu.memory_space<vmem>>, vector<1x128xf32>
    %c0_1 = arith.constant 0 : index
    %c0_2 = arith.constant 0 : index
    %1 = vector.load %arg2[%c0_1, %c0_2] : memref<8x10xf32, #tpu.memory_space<vmem>>, vector<8x10xf32>
    %c0_3 = arith.constant 0 : index
    %c0_4 = arith.constant 0 : index
    %2 = vector.load %arg3[%c0_3, %c0_4] : memref<8x1xf32, #tpu.memory_space<vmem>>, vector<8x1xf32>
    %3 = vector.extract_strided_slice %1 {offsets = [0, 0], sizes = [8, 1], strides = [1, 1]} : vector<8x10xf32> to vector<8x1xf32>
    %4 = vector.extract_strided_slice %0 {offsets = [0, 0], sizes = [1, 119], strides = [1, 1]} : vector<1x128xf32> to vector<1x119xf32>
    %5 = vector.broadcast %3 : vector<8x1xf32> to vector<8x119xf32>
    %6 = vector.broadcast %4 : vector<1x119xf32> to vector<8x119xf32>
    %7 = arith.mulf %5, %6 : vector<8x119xf32>
    %8 = vector.extract_strided_slice %1 {offsets = [0, 1], sizes = [8, 1], strides = [1, 1]} : vector<8x10xf32> to vector<8x1xf32>
    %9 = vector.extract_strided_slice %0 {offsets = [0, 1], sizes = [1, 119], strides = [1, 1]} : vector<1x128xf32> to vector<1x119xf32>
    %10 = vector.broadcast %8 : vector<8x1xf32> to vector<8x119xf32>
    %11 = vector.broadcast %9 : vector<1x119xf32> to vector<8x119xf32>
    %12 = arith.mulf %10, %11 : vector<8x119xf32>
    %13 = arith.addf %7, %12 : vector<8x119xf32>
    %14 = vector.extract_strided_slice %1 {offsets = [0, 2], sizes = [8, 1], strides = [1, 1]} : vector<8x10xf32> to vector<8x1xf32>
    %15 = vector.extract_strided_slice %0 {offsets = [0, 2], sizes = [1, 119], strides = [1, 1]} : vector<1x128xf32> to vector<1x119xf32>
    %16 = vector.broadcast %14 : vector<8x1xf32> to vector<8x119xf32>
    %17 = vector.broadcast %15 : vector<1x119xf32> to vector<8x119xf32>
    %18 = arith.mulf %16, %17 : vector<8x119xf32>
    %19 = arith.addf %13, %18 : vector<8x119xf32>
    %20 = vector.extract_strided_slice %1 {offsets = [0, 3], sizes = [8, 1], strides = [1, 1]} : vector<8x10xf32> to vector<8x1xf32>
    %21 = vector.extract_strided_slice %0 {offsets = [0, 3], sizes = [1, 119], strides = [1, 1]} : vector<1x128xf32> to vector<1x119xf32>
    %22 = vector.broadcast %20 : vector<8x1xf32> to vector<8x119xf32>
    %23 = vector.broadcast %21 : vector<1x119xf32> to vector<8x119xf32>
    %24 = arith.mulf %22, %23 : vector<8x119xf32>
    %25 = arith.addf %19, %24 : vector<8x119xf32>
    %26 = vector.extract_strided_slice %1 {offsets = [0, 4], sizes = [8, 1], strides = [1, 1]} : vector<8x10xf32> to vector<8x1xf32>
    %27 = vector.extract_strided_slice %0 {offsets = [0, 4], sizes = [1, 119], strides = [1, 1]} : vector<1x128xf32> to vector<1x119xf32>
    %28 = vector.broadcast %26 : vector<8x1xf32> to vector<8x119xf32>
    %29 = vector.broadcast %27 : vector<1x119xf32> to vector<8x119xf32>
    %30 = arith.mulf %28, %29 : vector<8x119xf32>
    %31 = arith.addf %25, %30 : vector<8x119xf32>
    %32 = vector.extract_strided_slice %1 {offsets = [0, 5], sizes = [8, 1], strides = [1, 1]} : vector<8x10xf32> to vector<8x1xf32>
    %33 = vector.extract_strided_slice %0 {offsets = [0, 5], sizes = [1, 119], strides = [1, 1]} : vector<1x128xf32> to vector<1x119xf32>
    %34 = vector.broadcast %32 : vector<8x1xf32> to vector<8x119xf32>
    %35 = vector.broadcast %33 : vector<1x119xf32> to vector<8x119xf32>
    %36 = arith.mulf %34, %35 : vector<8x119xf32>
    %37 = arith.addf %31, %36 : vector<8x119xf32>
    %38 = vector.extract_strided_slice %1 {offsets = [0, 6], sizes = [8, 1], strides = [1, 1]} : vector<8x10xf32> to vector<8x1xf32>
    %39 = vector.extract_strided_slice %0 {offsets = [0, 6], sizes = [1, 119], strides = [1, 1]} : vector<1x128xf32> to vector<1x119xf32>
    %40 = vector.broadcast %38 : vector<8x1xf32> to vector<8x119xf32>
    %41 = vector.broadcast %39 : vector<1x119xf32> to vector<8x119xf32>
    %42 = arith.mulf %40, %41 : vector<8x119xf32>
    %43 = arith.addf %37, %42 : vector<8x119xf32>
    %44 = vector.extract_strided_slice %1 {offsets = [0, 7], sizes = [8, 1], strides = [1, 1]} : vector<8x10xf32> to vector<8x1xf32>
    %45 = vector.extract_strided_slice %0 {offsets = [0, 7], sizes = [1, 119], strides = [1, 1]} : vector<1x128xf32> to vector<1x119xf32>
    %46 = vector.broadcast %44 : vector<8x1xf32> to vector<8x119xf32>
    %47 = vector.broadcast %45 : vector<1x119xf32> to vector<8x119xf32>
    %48 = arith.mulf %46, %47 : vector<8x119xf32>
    %49 = arith.addf %43, %48 : vector<8x119xf32>
    %50 = vector.extract_strided_slice %1 {offsets = [0, 8], sizes = [8, 1], strides = [1, 1]} : vector<8x10xf32> to vector<8x1xf32>
    %51 = vector.extract_strided_slice %0 {offsets = [0, 8], sizes = [1, 119], strides = [1, 1]} : vector<1x128xf32> to vector<1x119xf32>
    %52 = vector.broadcast %50 : vector<8x1xf32> to vector<8x119xf32>
    %53 = vector.broadcast %51 : vector<1x119xf32> to vector<8x119xf32>
    %54 = arith.mulf %52, %53 : vector<8x119xf32>
    %55 = arith.addf %49, %54 : vector<8x119xf32>
    %56 = vector.extract_strided_slice %1 {offsets = [0, 9], sizes = [8, 1], strides = [1, 1]} : vector<8x10xf32> to vector<8x1xf32>
    %57 = vector.extract_strided_slice %0 {offsets = [0, 9], sizes = [1, 119], strides = [1, 1]} : vector<1x128xf32> to vector<1x119xf32>
    %58 = vector.broadcast %56 : vector<8x1xf32> to vector<8x119xf32>
    %59 = vector.broadcast %57 : vector<1x119xf32> to vector<8x119xf32>
    %60 = arith.mulf %58, %59 : vector<8x119xf32>
    %61 = arith.addf %55, %60 : vector<8x119xf32>
    %62 = vector.broadcast %2 : vector<8x1xf32> to vector<8x119xf32>
    %63 = arith.addf %61, %62 : vector<8x119xf32>
    %cst = arith.constant 0.000000e+00 : f32
    %64 = vector.broadcast %cst : f32 to vector<8x119xf32>
    %65 = arith.maximumf %63, %64 : vector<8x119xf32>
    %c0_5 = arith.constant 0 : index
    %c0_6 = arith.constant 0 : index
    %66 = vector.load %arg4[%c0_5, %c0_6] : memref<16x80xf32, #tpu.memory_space<vmem>>, vector<16x80xf32>
    %c0_7 = arith.constant 0 : index
    %c0_8 = arith.constant 0 : index
    %67 = vector.load %arg5[%c0_7, %c0_8] : memref<16x1xf32, #tpu.memory_space<vmem>>, vector<16x1xf32>
    %68 = vector.extract_strided_slice %66 {offsets = [0, 0], sizes = [16, 8], strides = [1, 1]} : vector<16x80xf32> to vector<16x8xf32>
    %69 = vector.extract_strided_slice %65 {offsets = [0, 0], sizes = [8, 110], strides = [1, 1]} : vector<8x119xf32> to vector<8x110xf32>
    %cst_9 = arith.constant dense<0.000000e+00> : vector<16x110xf32>
    %70 = tpu.matmul %68, %69, %cst_9 {dimension_numbers = #tpu.dot_dimension_numbers<[1], [0], [0], [1], [0, 0, 1, 1], [], []>} : vector<16x8xf32>, vector<8x110xf32>, vector<16x110xf32> -> vector<16x110xf32>
    %71 = vector.extract_strided_slice %66 {offsets = [0, 8], sizes = [16, 8], strides = [1, 1]} : vector<16x80xf32> to vector<16x8xf32>
    %72 = vector.extract_strided_slice %65 {offsets = [0, 1], sizes = [8, 110], strides = [1, 1]} : vector<8x119xf32> to vector<8x110xf32>
    %cst_10 = arith.constant dense<0.000000e+00> : vector<16x110xf32>
    %73 = tpu.matmul %71, %72, %cst_10 {dimension_numbers = #tpu.dot_dimension_numbers<[1], [0], [0], [1], [0, 0, 1, 1], [], []>} : vector<16x8xf32>, vector<8x110xf32>, vector<16x110xf32> -> vector<16x110xf32>
    %74 = arith.addf %70, %73 : vector<16x110xf32>
    %75 = vector.extract_strided_slice %66 {offsets = [0, 16], sizes = [16, 8], strides = [1, 1]} : vector<16x80xf32> to vector<16x8xf32>
    %76 = vector.extract_strided_slice %65 {offsets = [0, 2], sizes = [8, 110], strides = [1, 1]} : vector<8x119xf32> to vector<8x110xf32>
    %cst_11 = arith.constant dense<0.000000e+00> : vector<16x110xf32>
    %77 = tpu.matmul %75, %76, %cst_11 {dimension_numbers = #tpu.dot_dimension_numbers<[1], [0], [0], [1], [0, 0, 1, 1], [], []>} : vector<16x8xf32>, vector<8x110xf32>, vector<16x110xf32> -> vector<16x110xf32>
    %78 = arith.addf %74, %77 : vector<16x110xf32>
    %79 = vector.extract_strided_slice %66 {offsets = [0, 24], sizes = [16, 8], strides = [1, 1]} : vector<16x80xf32> to vector<16x8xf32>
    %80 = vector.extract_strided_slice %65 {offsets = [0, 3], sizes = [8, 110], strides = [1, 1]} : vector<8x119xf32> to vector<8x110xf32>
    %cst_12 = arith.constant dense<0.000000e+00> : vector<16x110xf32>
    %81 = tpu.matmul %79, %80, %cst_12 {dimension_numbers = #tpu.dot_dimension_numbers<[1], [0], [0], [1], [0, 0, 1, 1], [], []>} : vector<16x8xf32>, vector<8x110xf32>, vector<16x110xf32> -> vector<16x110xf32>
    %82 = arith.addf %78, %81 : vector<16x110xf32>
    %83 = vector.extract_strided_slice %66 {offsets = [0, 32], sizes = [16, 8], strides = [1, 1]} : vector<16x80xf32> to vector<16x8xf32>
    %84 = vector.extract_strided_slice %65 {offsets = [0, 4], sizes = [8, 110], strides = [1, 1]} : vector<8x119xf32> to vector<8x110xf32>
    %cst_13 = arith.constant dense<0.000000e+00> : vector<16x110xf32>
    %85 = tpu.matmul %83, %84, %cst_13 {dimension_numbers = #tpu.dot_dimension_numbers<[1], [0], [0], [1], [0, 0, 1, 1], [], []>} : vector<16x8xf32>, vector<8x110xf32>, vector<16x110xf32> -> vector<16x110xf32>
    %86 = arith.addf %82, %85 : vector<16x110xf32>
    %87 = vector.extract_strided_slice %66 {offsets = [0, 40], sizes = [16, 8], strides = [1, 1]} : vector<16x80xf32> to vector<16x8xf32>
    %88 = vector.extract_strided_slice %65 {offsets = [0, 5], sizes = [8, 110], strides = [1, 1]} : vector<8x119xf32> to vector<8x110xf32>
    %cst_14 = arith.constant dense<0.000000e+00> : vector<16x110xf32>
    %89 = tpu.matmul %87, %88, %cst_14 {dimension_numbers = #tpu.dot_dimension_numbers<[1], [0], [0], [1], [0, 0, 1, 1], [], []>} : vector<16x8xf32>, vector<8x110xf32>, vector<16x110xf32> -> vector<16x110xf32>
    %90 = arith.addf %86, %89 : vector<16x110xf32>
    %91 = vector.extract_strided_slice %66 {offsets = [0, 48], sizes = [16, 8], strides = [1, 1]} : vector<16x80xf32> to vector<16x8xf32>
    %92 = vector.extract_strided_slice %65 {offsets = [0, 6], sizes = [8, 110], strides = [1, 1]} : vector<8x119xf32> to vector<8x110xf32>
    %cst_15 = arith.constant dense<0.000000e+00> : vector<16x110xf32>
    %93 = tpu.matmul %91, %92, %cst_15 {dimension_numbers = #tpu.dot_dimension_numbers<[1], [0], [0], [1], [0, 0, 1, 1], [], []>} : vector<16x8xf32>, vector<8x110xf32>, vector<16x110xf32> -> vector<16x110xf32>
    %94 = arith.addf %90, %93 : vector<16x110xf32>
    %95 = vector.extract_strided_slice %66 {offsets = [0, 56], sizes = [16, 8], strides = [1, 1]} : vector<16x80xf32> to vector<16x8xf32>
    %96 = vector.extract_strided_slice %65 {offsets = [0, 7], sizes = [8, 110], strides = [1, 1]} : vector<8x119xf32> to vector<8x110xf32>
    %cst_16 = arith.constant dense<0.000000e+00> : vector<16x110xf32>
    %97 = tpu.matmul %95, %96, %cst_16 {dimension_numbers = #tpu.dot_dimension_numbers<[1], [0], [0], [1], [0, 0, 1, 1], [], []>} : vector<16x8xf32>, vector<8x110xf32>, vector<16x110xf32> -> vector<16x110xf32>
    %98 = arith.addf %94, %97 : vector<16x110xf32>
    %99 = vector.extract_strided_slice %66 {offsets = [0, 64], sizes = [16, 8], strides = [1, 1]} : vector<16x80xf32> to vector<16x8xf32>
    %100 = vector.extract_strided_slice %65 {offsets = [0, 8], sizes = [8, 110], strides = [1, 1]} : vector<8x119xf32> to vector<8x110xf32>
    %cst_17 = arith.constant dense<0.000000e+00> : vector<16x110xf32>
    %101 = tpu.matmul %99, %100, %cst_17 {dimension_numbers = #tpu.dot_dimension_numbers<[1], [0], [0], [1], [0, 0, 1, 1], [], []>} : vector<16x8xf32>, vector<8x110xf32>, vector<16x110xf32> -> vector<16x110xf32>
    %102 = arith.addf %98, %101 : vector<16x110xf32>
    %103 = vector.extract_strided_slice %66 {offsets = [0, 72], sizes = [16, 8], strides = [1, 1]} : vector<16x80xf32> to vector<16x8xf32>
    %104 = vector.extract_strided_slice %65 {offsets = [0, 9], sizes = [8, 110], strides = [1, 1]} : vector<8x119xf32> to vector<8x110xf32>
    %cst_18 = arith.constant dense<0.000000e+00> : vector<16x110xf32>
    %105 = tpu.matmul %103, %104, %cst_18 {dimension_numbers = #tpu.dot_dimension_numbers<[1], [0], [0], [1], [0, 0, 1, 1], [], []>} : vector<16x8xf32>, vector<8x110xf32>, vector<16x110xf32> -> vector<16x110xf32>
    %106 = arith.addf %102, %105 : vector<16x110xf32>
    %107 = vector.broadcast %67 : vector<16x1xf32> to vector<16x110xf32>
    %108 = arith.addf %106, %107 : vector<16x110xf32>
    %cst_19 = arith.constant 0.000000e+00 : f32
    %109 = vector.broadcast %cst_19 : f32 to vector<16x110xf32>
    %110 = arith.maximumf %108, %109 : vector<16x110xf32>
    %111 = vector.extract_strided_slice %110 {offsets = [0, 0], sizes = [1, 46], strides = [1, 1]} : vector<16x110xf32> to vector<1x46xf32>
    %112 = vector.extract_strided_slice %110 {offsets = [1, 0], sizes = [1, 46], strides = [1, 1]} : vector<16x110xf32> to vector<1x46xf32>
    %113 = vector.extract_strided_slice %110 {offsets = [2, 0], sizes = [1, 46], strides = [1, 1]} : vector<16x110xf32> to vector<1x46xf32>
    %114 = vector.extract_strided_slice %110 {offsets = [3, 0], sizes = [1, 46], strides = [1, 1]} : vector<16x110xf32> to vector<1x46xf32>
    %115 = vector.extract_strided_slice %110 {offsets = [4, 0], sizes = [1, 46], strides = [1, 1]} : vector<16x110xf32> to vector<1x46xf32>
    %116 = vector.extract_strided_slice %110 {offsets = [5, 0], sizes = [1, 46], strides = [1, 1]} : vector<16x110xf32> to vector<1x46xf32>
    %117 = vector.extract_strided_slice %110 {offsets = [6, 0], sizes = [1, 46], strides = [1, 1]} : vector<16x110xf32> to vector<1x46xf32>
    %118 = vector.extract_strided_slice %110 {offsets = [7, 0], sizes = [1, 46], strides = [1, 1]} : vector<16x110xf32> to vector<1x46xf32>
    %119 = vector.extract_strided_slice %110 {offsets = [8, 0], sizes = [1, 46], strides = [1, 1]} : vector<16x110xf32> to vector<1x46xf32>
    %120 = vector.extract_strided_slice %110 {offsets = [9, 0], sizes = [1, 46], strides = [1, 1]} : vector<16x110xf32> to vector<1x46xf32>
    %121 = vector.extract_strided_slice %110 {offsets = [10, 0], sizes = [1, 46], strides = [1, 1]} : vector<16x110xf32> to vector<1x46xf32>
    %122 = vector.extract_strided_slice %110 {offsets = [11, 0], sizes = [1, 46], strides = [1, 1]} : vector<16x110xf32> to vector<1x46xf32>
    %123 = vector.extract_strided_slice %110 {offsets = [12, 0], sizes = [1, 46], strides = [1, 1]} : vector<16x110xf32> to vector<1x46xf32>
    %124 = vector.extract_strided_slice %110 {offsets = [13, 0], sizes = [1, 46], strides = [1, 1]} : vector<16x110xf32> to vector<1x46xf32>
    %125 = vector.extract_strided_slice %110 {offsets = [14, 0], sizes = [1, 46], strides = [1, 1]} : vector<16x110xf32> to vector<1x46xf32>
    %126 = vector.extract_strided_slice %110 {offsets = [15, 0], sizes = [1, 46], strides = [1, 1]} : vector<16x110xf32> to vector<1x46xf32>
    %127 = tpu.concatenate %111, %112, %113, %114, %115, %116, %117, %118, %119, %120, %121, %122, %123, %124, %125, %126 in 1 : vector<1x46xf32>, vector<1x46xf32>, vector<1x46xf32>, vector<1x46xf32>, vector<1x46xf32>, vector<1x46xf32>, vector<1x46xf32>, vector<1x46xf32>, vector<1x46xf32>, vector<1x46xf32>, vector<1x46xf32>, vector<1x46xf32>, vector<1x46xf32>, vector<1x46xf32>, vector<1x46xf32>, vector<1x46xf32> -> vector<1x736xf32>
    %128 = vector.extract_strided_slice %110 {offsets = [0, 64], sizes = [1, 46], strides = [1, 1]} : vector<16x110xf32> to vector<1x46xf32>
    %129 = vector.extract_strided_slice %110 {offsets = [1, 64], sizes = [1, 46], strides = [1, 1]} : vector<16x110xf32> to vector<1x46xf32>
    %130 = vector.extract_strided_slice %110 {offsets = [2, 64], sizes = [1, 46], strides = [1, 1]} : vector<16x110xf32> to vector<1x46xf32>
    %131 = vector.extract_strided_slice %110 {offsets = [3, 64], sizes = [1, 46], strides = [1, 1]} : vector<16x110xf32> to vector<1x46xf32>
    %132 = vector.extract_strided_slice %110 {offsets = [4, 64], sizes = [1, 46], strides = [1, 1]} : vector<16x110xf32> to vector<1x46xf32>
    %133 = vector.extract_strided_slice %110 {offsets = [5, 64], sizes = [1, 46], strides = [1, 1]} : vector<16x110xf32> to vector<1x46xf32>
    %134 = vector.extract_strided_slice %110 {offsets = [6, 64], sizes = [1, 46], strides = [1, 1]} : vector<16x110xf32> to vector<1x46xf32>
    %135 = vector.extract_strided_slice %110 {offsets = [7, 64], sizes = [1, 46], strides = [1, 1]} : vector<16x110xf32> to vector<1x46xf32>
    %136 = vector.extract_strided_slice %110 {offsets = [8, 64], sizes = [1, 46], strides = [1, 1]} : vector<16x110xf32> to vector<1x46xf32>
    %137 = vector.extract_strided_slice %110 {offsets = [9, 64], sizes = [1, 46], strides = [1, 1]} : vector<16x110xf32> to vector<1x46xf32>
    %138 = vector.extract_strided_slice %110 {offsets = [10, 64], sizes = [1, 46], strides = [1, 1]} : vector<16x110xf32> to vector<1x46xf32>
    %139 = vector.extract_strided_slice %110 {offsets = [11, 64], sizes = [1, 46], strides = [1, 1]} : vector<16x110xf32> to vector<1x46xf32>
    %140 = vector.extract_strided_slice %110 {offsets = [12, 64], sizes = [1, 46], strides = [1, 1]} : vector<16x110xf32> to vector<1x46xf32>
    %141 = vector.extract_strided_slice %110 {offsets = [13, 64], sizes = [1, 46], strides = [1, 1]} : vector<16x110xf32> to vector<1x46xf32>
    %142 = vector.extract_strided_slice %110 {offsets = [14, 64], sizes = [1, 46], strides = [1, 1]} : vector<16x110xf32> to vector<1x46xf32>
    %143 = vector.extract_strided_slice %110 {offsets = [15, 64], sizes = [1, 46], strides = [1, 1]} : vector<16x110xf32> to vector<1x46xf32>
    %144 = tpu.concatenate %128, %129, %130, %131, %132, %133, %134, %135, %136, %137, %138, %139, %140, %141, %142, %143 in 1 : vector<1x46xf32>, vector<1x46xf32>, vector<1x46xf32>, vector<1x46xf32>, vector<1x46xf32>, vector<1x46xf32>, vector<1x46xf32>, vector<1x46xf32>, vector<1x46xf32>, vector<1x46xf32>, vector<1x46xf32>, vector<1x46xf32>, vector<1x46xf32>, vector<1x46xf32>, vector<1x46xf32>, vector<1x46xf32> -> vector<1x736xf32>
    %145 = tpu.concatenate %127, %144 in 0 : vector<1x736xf32>, vector<1x736xf32> -> vector<2x736xf32>
    %c0_20 = arith.constant 0 : index
    %c0_21 = arith.constant 0 : index
    %146 = vector.load %arg6[%c0_20, %c0_21] : memref<736x8xf32, #tpu.memory_space<vmem>>, vector<736x8xf32>
    %cst_22 = arith.constant dense<0.000000e+00> : vector<2x8xf32>
    %147 = tpu.matmul %145, %146, %cst_22 {dimension_numbers = #tpu.dot_dimension_numbers<[1], [0], [0], [1], [0, 0, 1, 1], [], []>} : vector<2x736xf32>, vector<736x8xf32>, vector<2x8xf32> -> vector<2x8xf32>
    %c0_23 = arith.constant 0 : index
    %c0_24 = arith.constant 0 : index
    %148 = vector.load %arg7[%c0_23, %c0_24] : memref<1x8xf32, #tpu.memory_space<vmem>>, vector<1x8xf32>
    %149 = vector.broadcast %148 : vector<1x8xf32> to vector<2x8xf32>
    %150 = arith.addf %147, %149 : vector<2x8xf32>
    %c0_25 = arith.constant 0 : index
    %c0_26 = arith.constant 0 : index
    %151 = vector.load %arg8[%c0_25, %c0_26] : memref<2x8xf32, #tpu.memory_space<vmem>>, vector<2x8xf32>
    tpu.vector_store %arg8[%c0_25, %c0_26], %150 {strides = array<i32>} : memref<2x8xf32, #tpu.memory_space<vmem>>, vector<2x8xf32>,
    return
  }
  func.func @transform_0(%arg0: i32) -> (i32, i32) {
    %c0_i32 = arith.constant 0 : i32
    %c0_i32_0 = arith.constant 0 : i32
    return %c0_i32, %arg0 : i32, i32
  }
  func.func @transform_1(%arg0: i32) -> (i32, i32) {
    %c0_i32 = arith.constant 0 : i32
    %c0_i32_0 = arith.constant 0 : i32
    %c0_i32_1 = arith.constant 0 : i32
    return %c0_i32, %c0_i32_0 : i32, i32
  }
  func.func @transform_2(%arg0: i32) -> (i32, i32) {
    %c0_i32 = arith.constant 0 : i32
    %c0_i32_0 = arith.constant 0 : i32
    %c0_i32_1 = arith.constant 0 : i32
    return %c0_i32, %c0_i32_0 : i32, i32
  }
  func.func @transform_3(%arg0: i32) -> (i32, i32) {
    %c0_i32 = arith.constant 0 : i32
    %c0_i32_0 = arith.constant 0 : i32
    %c0_i32_1 = arith.constant 0 : i32
    return %c0_i32, %c0_i32_0 : i32, i32
  }
  func.func @transform_4(%arg0: i32) -> (i32, i32) {
    %c0_i32 = arith.constant 0 : i32
    %c0_i32_0 = arith.constant 0 : i32
    %c0_i32_1 = arith.constant 0 : i32
    return %c0_i32, %c0_i32_0 : i32, i32
  }
  func.func @transform_5(%arg0: i32) -> (i32, i32) {
    %c0_i32 = arith.constant 0 : i32
    %c0_i32_0 = arith.constant 0 : i32
    %c0_i32_1 = arith.constant 0 : i32
    return %c0_i32, %c0_i32_0 : i32, i32
  }
  func.func @transform_6(%arg0: i32) -> (i32, i32) {
    %c0_i32 = arith.constant 0 : i32
    %c0_i32_0 = arith.constant 0 : i32
    %c0_i32_1 = arith.constant 0 : i32
    return %c0_i32, %c0_i32_0 : i32, i32
  }
  func.func @transform_7(%arg0: i32) -> (i32, i32) {
    %c0_i32 = arith.constant 0 : i32
    %c0_i32_0 = arith.constant 0 : i32
    return %arg0, %c0_i32 : i32, i32
  }
}

</mosaic_0001>

<bundles_post_ra>
// kernel: tpu_custom_call.1
= control target key start
LH: loop header
LB: loop body
LE: loop exit
PB: predicated region body
PF: predicated region fallthrough
CT: control target
= control target key end

     0   :  { %v1924_v1 = vmov 3   ;;  %v1925_v2 = vmov 1   ;;  %s2508_s0 = inlined_call_operand.vmem [shape: f32[1,128], index: 0, kind: input, shape index: {}]   ;;  %s2509_s1 = inlined_call_operand.vmem [shape: f32[8,10], index: 1, kind: input, shape index: {}]   ;;  %s2510_s2 = inlined_call_operand.vmem [shape: f32[8,1], index: 2, kind: input, shape index: {}]   ;;  %s2511_s3 = inlined_call_operand.vmem [shape: f32[16,80], index: 3, kind: input, shape index: {}]   ;;  %s2512_s4 = inlined_call_operand.vmem [shape: f32[16,1], index: 4, kind: input, shape index: {}]   ;;  %s2513_s5 = inlined_call_operand.vmem [shape: f32[736,8], index: 5, kind: input, shape index: {}]   ;;  %s2514_s6 = inlined_call_operand.vmem [shape: f32[1,8], index: 6, kind: input, shape index: {}]   ;;  %s2515_s7 = inlined_call_operand.hbm [shape: f32[2,8], index: 7, kind: output, shape index: {}]  }
   0x1   :  { %v28_v0 = vld [vmem:[%s2509_s1] sm:$0xff]  ;;  %1891 = vset.pattern.permute.xlu1 %v1924_v1  ;;  %1889 = vset.pattern.permute.xlu0 %v1925_v2 }
   0x2   :  { %63 = vperm.xlu1 %1891, %v28_v0   ;;  %43 = vperm.xlu0 %1889, %v28_v0  }
   0x3   :  { %12 = vsyncpa [#allocation3], 0  ;;  %v1926_v3 = vmov 4   ;;  %v1927_v4 = vmov 2   ;;  %v1928_v5 = vmov 5   ;;  %v1929_v6 = vmov 6  }
   0x4   :  { %v1930_v7 = vmov 7   ;;  %v1931_v8 = vmov 9   ;;  %v1932_v9 = vmov 8   ;;  %v1933_v10 = vmov 0   ;;  %v1538_v11 = vld [vmem:[%s2508_s0] ss:$0 sm:$0xff] }
   0x5   :  { %s1934_s27 = smov 127   ;;  %s1935_s28 = smov 125   ;;  %v29_v24 = vld [vmem:[%s2510_s2] sm:$0xff]  ;;  %v2039_v31 = vld [vmem:[%s2511_s3 + $0x8] sm:$0xff]  ;;  %vm153_vm0 = vcmask 64512   ;;  %vm1095_vm1 = vcmask 80896  }
   0x6   :  { %1892 = vset.pattern.permute.xlu1 %v1926_v3  ;;  %1890 = vset.pattern.permute.xlu0 %v1927_v4  ;;  %s1936_s29 = smov 126   ;;  %s1937_s0 = smov 124   ;;  %v2044_v32 = vld [vmem:[%s2511_s3] sm:$0xff]  ;;  %v142_v57 = vld [vmem:[%s2512_s4 + $0x8] sm:$0xff]  ;;  %vm1091_vm2 = vcmask 375808   ;;  %vm1097_vm3 = vcmask 457728  }
   0x7   :  { %73 = vperm.xlu1 %1892, %v28_v0   ;;  %53 = vperm.xlu0 %1890, %v28_v0   ;;  %s1938_s30 = smov 123   ;;  %s1939_s10 = smov 122   ;;  %v141_v58 = vld [vmem:[%s2512_s4] sm:$0xff]  ;;  %vm1093_vm4 = vcmask 752640   ;;  %vm1099_vm5 = vcmask 834560   ;;  %vm1202_vm6 = vcmask 1040384  }
   0x8   :  { %s1940_s11 = smov 121   ;;  %s1941_s12 = smov 120   ;;  %vm1107_vm7 = vcmask 244736   ;;  %vm1109_vm8 = vcmask 621568   ;;  %vm1111_vm9 = vcmask 998400   ;;  %vm1101_vm10 = vcmask 162816  }
   0x9   :  { %s1942_s13 = smov 119   ;;  %s1943_s17 = smov 96   ;;  %vm1103_vm11 = vcmask 539648   ;;  %vm1105_vm12 = vcmask 916480   ;;  %vm1113_vm13 = vcmask 326656   ;;  %vm1117_vm14 = vcmask 31744  }
   0xa   :  { %s1944_s18 = smov 88   ;;  %s1945_s19 = smov 80   ;;  %vm1119_vm15 = vcmask 408576  }
   0xb   :  { %1893 = vset.pattern.permute.xlu1 %v1928_v5  ;;  %1894 = vset.pattern.permute.xlu0 %v1929_v6  ;;  %s1946_s3 = smov 72   ;;  %s1947_s20 = smov 112  }
   0xc   :  { %83 = vperm.xlu1 %1893, %v28_v0   ;;  %93 = vperm.xlu0 %1894, %v28_v0   ;;  %s1948_s21 = smov 64   ;;  %s1949_s22 = smov 104  }
   0xd   :  { %s1950_s23 = smov 56   ;;  %s1952_s24 = smov 48  }
   0xe   :  { %s1955_s4 = smov 74   ;;  %s1957_s1 = smov 10  }
   0xf   :  { %s1971_s26 = smov 68  }
  0x10   :  { %1895 = vset.pattern.permute.xlu1 %v1930_v7  ;;  %1897 = vset.pattern.permute.xlu0 %v1931_v8 }
  0x11   :  { %103 = vperm.xlu1 %1895, %v28_v0   ;;  %123 = vperm.xlu0 %1897, %v28_v0  }
  0x15   :  { %1896 = vset.pattern.permute.xlu1 %v1932_v9  ;;  %1899 = vset.pattern.permute.xlu0 %v1933_v10 }
  0x16   :  { %113 = vperm.xlu1 %1896, %v28_v0  }
  0x1a   :  { %1898 = vset.pattern.permute.xlu1 %v1933_v10 }
  0x1b   :  { %32 = vperm.xlu1 %1898, %v28_v0  }
  0x81   :  { %v64_v12 = vpop.permute.xlu1 %63  ;;  %v44_v13 = vpop.permute.xlu0 %43 }
  0x82   :  { %v46_v14 = vmul.f32 %v1538_v11, %v44_v13  ;;  %v66_v15 = vmul.f32 %v1538_v11, %v64_v12 }
  0x84   :  { %48 = vrot.lane.b32.xlu1 %v46_v14, %s1934_s27 }
  0x86   :  { %v74_v16 = vpop.permute.xlu1 %73  ;;  %v54_v17 = vpop.permute.xlu0 %53 }
  0x87   :  { %v56_v18 = vmul.f32 %v1538_v11, %v54_v17  ;;  %v76_v19 = vmul.f32 %v1538_v11, %v74_v16 }
  0x88   :  { %68 = vrot.lane.b32.xlu1 %v66_v15, %s1935_s28 }
  0x89   :  { %58 = vrot.lane.b32.xlu0 %v56_v18, %s1936_s29 }
  0x8b   :  { %v84_v20 = vpop.permute.xlu1 %83  ;;  %v94_v21 = vpop.permute.xlu0 %93 }
  0x8c   :  { %v86_v22 = vmul.f32 %v1538_v11, %v84_v20  ;;  %v96_v23 = vmul.f32 %v1538_v11, %v94_v21  ;;  %v1225_v21 = vld [vmem:[%s2513_s5 + $0x80] sm:$0xff] }
  0x8d   :  { %78 = vrot.lane.b32.xlu0 %v76_v19, %s1937_s0 }
  0x8e   :  { %88 = vrot.lane.b32.xlu1 %v86_v22, %s1938_s30  ;;  %v1226_v22 = vld [vmem:[%s2513_s5 + $0x88] sm:$0xff] }
  0x90   :  { %v104_v25 = vpop.permute.xlu1 %103  ;;  %v124_v27 = vpop.permute.xlu0 %123 }
  0x91   :  { %98 = vrot.lane.b32.xlu0 %v96_v23, %s1939_s10  ;;  %v106_v26 = vmul.f32 %v1538_v11, %v104_v25  ;;  %v126_v29 = vmul.f32 %v1538_v11, %v124_v27  ;;  %v1209_v23 = vld [vmem:[%s2513_s5] sm:$0xff]  ;;  %v1210_v25 = vld [vmem:[%s2513_s5 + $0x8] sm:$0xff]  ;;  %v1227_v27 = vld [vmem:[%s2513_s5 + $0x90] sm:$0xff] }
  0x92   :  { %134 = vperm.xlu1 %1898, %v29_v24   ;;  %v1711_v24 = vpack.c.bf16 %v1226_v22, %v1225_v21  ;;  %v1221_v22 = vld [vmem:[%s2513_s5 + $0x60] sm:$0xff] }
  0x95   :  { %108 = vrot.lane.b32.xlu0 %v106_v26, %s1940_s11  ;;  %v114_v28 = vpop.permute.xlu1 %113  ;;  %v1713_v26 = vpack.c.bf16 %v1210_v25, %v1209_v23  ;;  %v1222_v23 = vld [vmem:[%s2513_s5 + $0x68] sm:$0xff]  ;;  %v1279_v25 = vld [vmem:[%s2513_s5 + $0x230] sm:$0xff] }
  0x96   :  { %v116_v30 = vmul.f32 %v1538_v11, %v114_v28  ;;  %v1228_v28 = vld [vmem:[%s2513_s5 + $0x98] sm:$0xff] }
  0x98   :  { %118 = vrot.lane.b32.xlu1 %v116_v30, %s1941_s12 }
  0x99   :  { %128 = vrot.lane.b32.xlu0 %v126_v29, %s1942_s13  ;;  %v1211_v29 = vld [vmem:[%s2513_s5 + $0x10] sm:$0xff] }
  0x9a   :  { %v33_v33 = vpop.permute.xlu1 %32 }
  0x9b   :  { %v41_v34 = vmul.f32 %v1538_v11, %v33_v33 }
  0x9c   :  { %490 = vrot.lane.b32.xlu1 %v2039_v31, %s1943_s17 }
  0x9d   :  { %488 = vrot.lane.b32.xlu0 %v2044_v32, %s1943_s17  ;;  %s1968_s17 = smov 76  }
  0xa0   :  { %576 = vrot.lane.b32.xlu1 %v2044_v32, %s1944_s18 }
  0xa1   :  { %578 = vrot.lane.b32.xlu0 %v2039_v31, %s1944_s18  ;;  %s1969_s18 = smov 20  }
  0xa5   :  { %664 = vrot.lane.b32.xlu0 %v2044_v32, %s1945_s19 }
  0xf6   :  { %v49_v36 = vpop.permute.xlu1 %48 }
  0xf7   :  { %v51_v37 = vadd.f32 %v49_v36, %v41_v34  ;;  %v1230_v36 = vld [vmem:[%s2513_s5 + $0xa8] sm:$0xff] }
  0xfa   :  { %v69_v41 = vpop.permute.xlu1 %68 }
  0xfb   :  { %v59_v35 = vpop.permute.xlu0 %58 }
  0xfc   :  { %v61_v39 = vadd.f32 %v59_v35, %v51_v37  ;;  %v1229_v35 = vld [vmem:[%s2513_s5 + $0xa0] sm:$0xff] }
  0xfd   :  { %v1213_v37 = vld [vmem:[%s2513_s5 + $0x20] sm:$0xff] }
  0xfe   :  { %v71_v42 = vadd.f32 %v69_v41, %v61_v39  ;;  %v1214_v39 = vld [vmem:[%s2513_s5 + $0x28] sm:$0xff] }
  0xff   :  { %v79_v38 = vpop.permute.xlu0 %78 }
 0x100   :  { %v81_v44 = vadd.f32 %v79_v38, %v71_v42  ;;  %v89_v45 = vpop.permute.xlu1 %88  ;;  %v1719_v38 = vpack.c.bf16 %v1230_v36, %v1229_v35  ;;  %v1282_v35 = vld [vmem:[%s2513_s5 + $0x248] sm:$0xff] }
 0x102   :  { %v91_v47 = vadd.f32 %v89_v45, %v81_v44 }
 0x103   :  { %v99_v40 = vpop.permute.xlu0 %98 }
 0x104   :  { %v101_v50 = vadd.f32 %v99_v40, %v91_v47  ;;  %v1721_v40 = vpack.c.bf16 %v1214_v39, %v1213_v37  ;;  %v1231_v47 = vld [vmem:[%s2513_s5 + $0xb0] sm:$0xff]  ;;  %v1258_v39 = vld [vmem:[%s2513_s5 + $0x188] sm:$0xff] }
 0x107   :  { %v109_v43 = vpop.permute.xlu0 %108 }
 0x108   :  { %v111_v51 = vadd.f32 %v109_v43, %v101_v50 }
 0x10b   :  { %v129_v46 = vpop.permute.xlu0 %128 }
 0x10f   :  { %v489_v48 = vpop.permute.xlu0 %488 }
 0x110   :  { %1683 = vmatprep.mubr.msk.f32.mxu0 %vm153_vm0, %v489_v48  ;;  %v1232_v48 = vld [vmem:[%s2513_s5 + $0xb8] sm:$0xff] }
 0x111   :  { %v135_v49 = vpop.permute.xlu1 %134 }
 0x113   :  { %v579_v59 = vpop.permute.xlu0 %578 }
 0x115   :  { %v119_v52 = vpop.permute.xlu1 %118 }
 0x116   :  { %v121_v53 = vadd.f32 %v119_v52, %v111_v51  ;;  %v1723_v51 = vpack.c.bf16 %v1232_v48, %v1231_v47  ;;  %v1216_v52 = vld [vmem:[%s2513_s5 + $0x38] sm:$0xff]  ;;  %v1287_v48 = vld [vmem:[%s2513_s5 + $0x270] sm:$0xff] }
 0x117   :  { %v665_v61 = vpop.permute.xlu0 %664 }
 0x118   :  { %v131_v54 = vadd.f32 %v129_v46, %v121_v53  ;;  %v1951_v53 = vmov 0.0|0.0  }
 0x119   :  { %v491_v60 = vpop.permute.xlu1 %490 }
 0x11a   :  { %v137_v55 = vadd.f32 %v135_v49, %v131_v54  ;;  %v1215_v49 = vld [vmem:[%s2513_s5 + $0x30] sm:$0xff] }
 0x11c   :  { %v138_v56 = vmax.f32 %v137_v55, 0.0  ;;  %v1725_v55 = vpack.c.bf16 %v1216_v52, %v1215_v49  ;;  %v1288_v49 = vld [vmem:[%s2513_s5 + $0x278] sm:$0xff] }
 0x11d   :  { %v577_v62 = vpop.permute.xlu1 %576 }
 0x11e   :  { %580 = vrot.lane.b32.xlu0 %v138_v56, %s1938_s30  ;;  %492 = vrot.lane.b32.xlu1 %v138_v56, %s1937_s0  ;;  %s1953_s30 = smov 94   ;;  %s1965_s0 = smov 84  }
 0x122   :  { %666 = vrot.lane.b32.xlu0 %v2039_v31, %s1945_s19  ;;  %145 = vrot.lane.b32.xlu1 %v2044_v32, %s1941_s12 }
 0x126   :  { %668 = vrot.lane.b32.xlu0 %v138_v56, %s1939_s10  ;;  %147 = vrot.lane.b32.xlu1 %v2039_v31, %s1941_s12 }
 0x12a   :  { %752 = vrot.lane.b32.xlu0 %v2044_v32, %s1946_s3  ;;  %150 = vrot.lane.b32.xlu1 %v138_v56, %s1934_s27  ;;  %s1974_s27 = smov 40  }
 0x12e   :  { %312 = vrot.lane.b32.xlu0 %v2044_v32, %s1947_s20  ;;  %754 = vrot.lane.b32.xlu1 %v2039_v31, %s1946_s3  ;;  %s1954_s3 = smov 28  }
 0x132   :  { %314 = vrot.lane.b32.xlu0 %v2039_v31, %s1947_s20  ;;  %840 = vrot.lane.b32.xlu1 %v2044_v32, %s1948_s21 }
 0x136   :  { %316 = vrot.lane.b32.xlu0 %v138_v56, %s1936_s29  ;;  %756 = vrot.lane.b32.xlu1 %v138_v56, %s1940_s11  ;;  %s1958_s29 = smov 38   ;;  %s1959_s11 = smov 110  }
 0x13a   :  { %400 = vrot.lane.b32.xlu0 %v2044_v32, %s1949_s22  ;;  %842 = vrot.lane.b32.xlu1 %v2039_v31, %s1948_s21 }
 0x13e   :  { %404 = vrot.lane.b32.xlu0 %v138_v56, %s1935_s28  ;;  %844 = vrot.lane.b32.xlu1 %v138_v56, %s1941_s12  ;;  %s1975_s28 = smov 4  }
 0x142   :  { %928 = vrot.lane.b32.xlu1 %v2044_v32, %s1950_s23  ;;  %402 = vrot.lane.b32.xlu0 %v2039_v31, %s1949_s22 }
 0x146   :  { %932 = vrot.lane.b32.xlu1 %v138_v56, %s1942_s13  ;;  %1018 = vperm.xlu0 %1899, %v141_v58   ;;  %s1960_s13 = smov 46  }
 0x14a   :  { %930 = vrot.lane.b32.xlu1 %v2039_v31, %s1950_s23 }
 0x14e   :  { %1023 = vperm.xlu1 %1898, %v142_v57   ;;  %v1274_v57 = vld [vmem:[%s2513_s5 + $0x208] sm:$0xff] }
 0x190   :  { %v581_v63 = vpop.permute.xlu0 %580  ;;  %v493_v0 = vpop.permute.xlu1 %492 }
 0x191   :  { %1681 = vmatprep.subr.mxu0 %v493_v0 }
 0x192   :  { %1682 = vmatpush3.msra.mxu0 %v493_v0 }
 0x193   :  { %1684 = vmatmul.mubr.msk.f32.vlgmr.msra.gmra.mrb[0].mxu0 %vm153_vm0, %v491_v60  ;;  %1686 = vmatprep.subr.mxu0 %v581_v63  ;;  %v1233_v60 = vld [vmem:[%s2513_s5 + $0xc0] sm:$0xff] }
 0x194   :  { %v667_v1 = vpop.permute.xlu0 %666  ;;  %1687 = vmatpush3.msra.mxu0 %v581_v63  ;;  %1688 = vmatprep.mubr.msk.f32.mxu0 %vm153_vm0, %v577_v62  ;;  %v146_v2 = vpop.permute.xlu1 %145 }
 0x195   :  { %1663 = vmatprep.mubr.msk.f32.mxu1 %vm153_vm0, %v146_v2  ;;  %v1218_v2 = vld [vmem:[%s2513_s5 + $0x48] sm:$0xff] }
 0x198   :  { %v669_v3 = vpop.permute.xlu0 %668  ;;  %v148_v4 = vpop.permute.xlu1 %147 }
 0x199   :  { %1691 = vmatprep.subr.mxu0 %v669_v3 }
 0x19b   :  { %1689 = vmatmul.mubr.msk.f32.vlgmr.msra.gmra.mrb[0].mxu0 %vm153_vm0, %v579_v59 }
 0x19c   :  { %1692 = vmatpush3.msra.mxu0 %v669_v3  ;;  %v753_v5 = vpop.permute.xlu0 %752  ;;  %1693 = vmatprep.mubr.msk.f32.mxu0 %vm153_vm0, %v665_v61  ;;  %v151_v6 = vpop.permute.xlu1 %150  ;;  %v1234_v61 = vld [vmem:[%s2513_s5 + $0xc8] sm:$0xff]  ;;  %v1275_v3 = vld [vmem:[%s2513_s5 + $0x210] sm:$0xff] }
 0x19d   :  { %1661 = vmatprep.subr.mxu1 %v151_v6  ;;  %v1727_v62 = vpack.c.bf16 %v1234_v61, %v1233_v60  ;;  %v1292_v60 = vld [vmem:[%s2513_s5 + $0x298] sm:$0xff] }
 0x19e   :  { %1662 = vmatpush3.msra.mxu1 %v151_v6 }
 0x19f   :  { %1664 = vmatmul.mubr.msk.f32.vlgmr.msra.gmra.mrb[0].mxu1 %vm153_vm0, %v148_v4  ;;  %1666 = vmatprep.subr.mxu1 %v138_v56  ;;  %v1276_v4 = vld [vmem:[%s2513_s5 + $0x218] sm:$0xff] }
 0x1a0   :  { %v313_v7 = vpop.permute.xlu0 %312  ;;  %1667 = vmatpush3.msra.mxu1 %v138_v56  ;;  %v755_v8 = vpop.permute.xlu1 %754  ;;  %1668 = vmatprep.mubr.msk.f32.mxu1 %vm153_vm0, %v2044_v32  ;;  %v1212_v32 = vld [vmem:[%s2513_s5 + $0x18] sm:$0xff]  ;;  %v1273_v56 = vld [vmem:[%s2513_s5 + $0x200] sm:$0xff]  ;;  %v1779_v6 = vpack.c.bf16 %v1276_v4, %v1275_v3  ;;  %v1294_v3 = vld [vmem:[%s2513_s5 + $0x2a8] sm:$0xff] }
 0x1a1   :  { %v1717_v34 = vpack.c.bf16 %v1212_v32, %v1211_v29  ;;  %v1776_v59 = vpack.c.bf16 %v1274_v57, %v1273_v56  ;;  %v1240_v29 = vld [vmem:[%s2513_s5 + $0xf8] sm:$0xff] }
 0x1a2   :  { %v1224_v32 = vld [vmem:[%s2513_s5 + $0x78] sm:$0xff] }
 0x1a3   :  { %1694 = vmatmul.mubr.msk.f32.vlgmr.msra.gmra.mrb[0].mxu0 %vm153_vm0, %v667_v1  ;;  %v1217_v1 = vld [vmem:[%s2513_s5 + $0x40] sm:$0xff] }
 0x1a4   :  { %v315_v9 = vpop.permute.xlu0 %314  ;;  %v841_v10 = vpop.permute.xlu1 %840  ;;  %1698 = vmatprep.mubr.msk.f32.mxu0 %vm153_vm0, %v753_v5  ;;  %v1729_v5 = vpack.c.bf16 %v1218_v2, %v1217_v1  ;;  %v1293_v2 = vld [vmem:[%s2513_s5 + $0x2a0] sm:$0xff] }
 0x1a5   :  { %v1806_v4 = vpack.c.bf16 %v1294_v3, %v1293_v2 }
 0x1a7   :  { %1669 = vmatmul.mubr.msk.f32.vlgmr.msra.gmra.mrb[0].mxu1 %vm153_vm0, %v2039_v31  ;;  %v1715_v31 = vpack.c.bf16 %v1228_v28, %v1227_v27  ;;  %v1239_v28 = vld [vmem:[%s2513_s5 + $0xf0] sm:$0xff] }
 0x1a8   :  { %v317_v11 = vpop.permute.xlu0 %316  ;;  %v757_v12 = vpop.permute.xlu1 %756  ;;  %1673 = vmatprep.mubr.msk.f32.mxu1 %vm153_vm0, %v313_v7  ;;  %v1235_v7 = vld [vmem:[%s2513_s5 + $0xd0] sm:$0xff] }
 0x1a9   :  { %1671 = vmatprep.subr.mxu1 %v317_v11  ;;  %1696 = vmatprep.subr.mxu0 %v757_v12 }
 0x1aa   :  { %1672 = vmatpush3.msra.mxu1 %v317_v11  ;;  %1697 = vmatpush3.msra.mxu0 %v757_v12  ;;  %v1219_v11 = vld [vmem:[%s2513_s5 + $0x50] sm:$0xff]  ;;  %v1220_v12 = vld [vmem:[%s2513_s5 + $0x58] sm:$0xff] }
 0x1ab   :  { %1699 = vmatmul.mubr.msk.f32.vlgmr.msra.gmra.mrb[0].mxu0 %vm153_vm0, %v755_v8  ;;  %v1236_v8 = vld [vmem:[%s2513_s5 + $0xd8] sm:$0xff] }
 0x1ac   :  { %v401_v13 = vpop.permute.xlu0 %400  ;;  %1703 = vmatprep.mubr.msk.f32.mxu0 %vm153_vm0, %v841_v10  ;;  %v843_v14 = vpop.permute.xlu1 %842  ;;  %v1731_v10 = vpack.c.bf16 %v1236_v8, %v1235_v7  ;;  %v1297_v8 = vld [vmem:[%s2513_s5 + $0x2c0] sm:$0xff] }
 0x1af   :  { %1674 = vmatmul.mubr.msk.f32.vlgmr.msra.gmra.mrb[0].mxu1 %vm153_vm0, %v315_v9 }
 0x1b0   :  { %v405_v15 = vpop.permute.xlu0 %404  ;;  %v845_v16 = vpop.permute.xlu1 %844  ;;  %1678 = vmatprep.mubr.msk.f32.mxu1 %vm153_vm0, %v401_v13  ;;  %v1733_v13 = vpack.c.bf16 %v1220_v12, %v1219_v11  ;;  %v1299_v12 = vld [vmem:[%s2513_s5 + $0x2d0] sm:$0xff] }
 0x1b1   :  { %1676 = vmatprep.subr.mxu1 %v405_v15  ;;  %1701 = vmatprep.subr.mxu0 %v845_v16 }
 0x1b2   :  { %1677 = vmatpush3.msra.mxu1 %v405_v15  ;;  %1702 = vmatpush3.msra.mxu0 %v845_v16  ;;  %v1278_v15 = vld [vmem:[%s2513_s5 + $0x228] sm:$0xff] }
 0x1b3   :  { %1704 = vmatmul.mubr.msk.f32.vlgmr.msra.gmra.mrb[0].mxu0 %vm153_vm0, %v843_v14  ;;  %1712 = vmatprep.subr.bf16.mxu1 %v1711_v24  ;;  %v1277_v14 = vld [vmem:[%s2513_s5 + $0x220] sm:$0xff]  ;;  %v1737_v24 = vpack.c.bf16 %v1222_v23, %v1221_v22 }
 0x1b4   :  { %v929_v17 = vpop.permute.xlu1 %928  ;;  %v403_v18 = vpop.permute.xlu0 %402 }
 0x1b5   :  { %1708 = vmatprep.mubr.msk.f32.mxu0 %vm153_vm0, %v929_v17  ;;  %v1782_v17 = vpack.c.bf16 %v1278_v15, %v1277_v14 }
 0x1b7   :  { %1679 = vmatmul.mubr.msk.f32.vlgmr.msra.gmra.mrb[0].mxu1 %vm153_vm0, %v403_v18  ;;  %v1237_v18 = vld [vmem:[%s2513_s5 + $0xe0] sm:$0xff] }
 0x1b8   :  { %v933_v19 = vpop.permute.xlu1 %932  ;;  %1714 = vmatpush3.bf16.msra.mxu1 %v1713_v26  ;;  %v1280_v26 = vld [vmem:[%s2513_s5 + $0x238] sm:$0xff] }
 0x1b9   :  { %1706 = vmatprep.subr.mxu0 %v933_v19  ;;  %1716 = vmatprep.subr.bf16.mxu1 %v1715_v31  ;;  %v1785_v27 = vpack.c.bf16 %v1280_v26, %v1279_v25  ;;  %v1739_v31 = vpack.c.bf16 %v1240_v29, %v1239_v28 }
 0x1ba   :  { %1707 = vmatpush3.msra.mxu0 %v933_v19  ;;  %v1238_v19 = vld [vmem:[%s2513_s5 + $0xe8] sm:$0xff] }
 0x1bb   :  { %1775 = vmatprep.subr.bf16.mxu0 %v1951_v53  ;;  %v1735_v21 = vpack.c.bf16 %v1238_v19, %v1237_v18 }
 0x1bc   :  { %v931_v20 = vpop.permute.xlu1 %930  ;;  %1718 = vmatpush3.bf16.msra.mxu1 %v1717_v34  ;;  %v1281_v34 = vld [vmem:[%s2513_s5 + $0x240] sm:$0xff] }
 0x1bd   :  { %1709 = vmatmul.mubr.msk.f32.vlgmr.msra.gmra.mrb[0].mxu0 %vm153_vm0, %v931_v20  ;;  %1720 = vmatprep.subr.bf16.mxu1 %v1719_v38  ;;  %v1788_v37 = vpack.c.bf16 %v1282_v35, %v1281_v34  ;;  %v1257_v38 = vld [vmem:[%s2513_s5 + $0x180] sm:$0xff]  ;;  %v1242_v34 = vld [vmem:[%s2513_s5 + $0x108] sm:$0xff]  ;;  %vm1115_vm0 = vcmask 703488  }
 0x1be   :  { %1777 = vmatpush1.bf16.msra.mxu0 %v1776_v59  ;;  %v1291_v59 = vld [vmem:[%s2513_s5 + $0x290] sm:$0xff] }
 0x1bf   :  { %1778 = vmatprep.subr.bf16.mxu0 %v1951_v53 }
 0x1c0   :  { %1722 = vmatpush3.bf16.msra.mxu1 %v1721_v40 }
 0x1c1   :  { %1724 = vmatprep.subr.bf16.mxu1 %v1723_v51  ;;  %v1797_v51 = vpack.c.bf16 %v1288_v49, %v1287_v48  ;;  %v1244_v48 = vld [vmem:[%s2513_s5 + $0x118] sm:$0xff] }
 0x1c2   :  { %1780 = vmatpush1.bf16.msra.mxu0 %v1779_v6  ;;  %v1296_v6 = vld [vmem:[%s2513_s5 + $0x2b8] sm:$0xff] }
 0x1c3   :  { %1781 = vmatprep.subr.bf16.mxu0 %v1951_v53 }
 0x1c4   :  { %1726 = vmatpush3.bf16.msra.mxu1 %v1725_v55  ;;  %v1290_v55 = vld [vmem:[%s2513_s5 + $0x288] sm:$0xff] }
 0x1c5   :  { %v1019_v44 = vpop.permute.xlu0 %1018  ;;  %1728 = vmatprep.subr.bf16.mxu1 %v1727_v62  ;;  %v1803_v62 = vpack.c.bf16 %v1292_v60, %v1291_v59  ;;  %v1246_v59 = vld [vmem:[%s2513_s5 + $0x128] sm:$0xff]  ;;  %v1263_v60 = vld [vmem:[%s2513_s5 + $0x1b0] sm:$0xff] }
 0x1c6   :  { %1783 = vmatpush1.bf16.msra.mxu0 %v1782_v17 }
 0x1c7   :  { %1784 = vmatprep.subr.bf16.mxu0 %v1951_v53 }
 0x1c8   :  { %1730 = vmatpush3.bf16.msra.mxu1 %v1729_v5  ;;  %v1295_v5 = vld [vmem:[%s2513_s5 + $0x2b0] sm:$0xff] }
 0x1c9   :  { %1732 = vmatprep.subr.bf16.mxu1 %v1731_v10  ;;  %v1809_v7 = vpack.c.bf16 %v1296_v6, %v1295_v5  ;;  %v1265_v5 = vld [vmem:[%s2513_s5 + $0x1c0] sm:$0xff]  ;;  %v1266_v6 = vld [vmem:[%s2513_s5 + $0x1c8] sm:$0xff] }
 0x1ca   :  { %1786 = vmatpush1.bf16.msra.mxu0 %v1785_v27 }
 0x1cb   :  { %1787 = vmatprep.subr.bf16.mxu0 %v1951_v53 }
 0x1cc   :  { %1734 = vmatpush3.bf16.msra.mxu1 %v1733_v13  ;;  %v1300_v13 = vld [vmem:[%s2513_s5 + $0x2d8] sm:$0xff] }
 0x1cd   :  { %v1024_v45 = vpop.permute.xlu1 %1023  ;;  %1736 = vmatprep.subr.bf16.mxu1 %v1735_v21  ;;  %v1815_v14 = vpack.c.bf16 %v1300_v13, %v1299_v12  ;;  %v1250_v12 = vld [vmem:[%s2513_s5 + $0x148] sm:$0xff] }
 0x1ce   :  { %1789 = vmatpush1.bf16.msra.mxu0 %v1788_v37  ;;  %v1259_v37 = vld [vmem:[%s2513_s5 + $0x190] sm:$0xff] }
 0x1cf   :  { %1790 = vmatprep.subr.bf16.mxu0 %v1951_v53 }
 0x1d0   :  { %1738 = vmatpush3.bf16.msra.mxu1 %v1737_v24 }
 0x1d1   :  { %1740 = vmatprep.subr.bf16.mxu1 %v1739_v31 }
 0x28a   :  { %v1680_v30 = vpop.f32.mrb[0].mxu1 }
 0x28b   :  { %v477_v33 = vpop.f32.mrb[1].mxu1 }
 0x290   :  { %v1710_v41 = vpop.f32.mrb[0].mxu0 }
 0x291   :  { %v1817_v42 = vadd.f32 %v1710_v41, %v1680_v30  ;;  %v1005_v43 = vpop.f32.mrb[1].mxu0  ;;  %v1223_v30 = vld [vmem:[%s2513_s5 + $0x70] sm:$0xff]  ;;  %v1743_v41 = vpack.c.bf16 %v1258_v39, %v1257_v38 }
 0x292   :  { %v1818_v46 = vadd.f32 %v1005_v43, %v477_v33  ;;  %v1741_v33 = vpack.c.bf16 %v1224_v32, %v1223_v30  ;;  %v1284_v43 = vld [vmem:[%s2513_s5 + $0x258] sm:$0xff] }
 0x293   :  { %v1027_v50 = vadd.f32 %v1817_v42, %v1024_v45  ;;  %v1283_v42 = vld [vmem:[%s2513_s5 + $0x250] sm:$0xff]  ;;  %v1285_v45 = vld [vmem:[%s2513_s5 + $0x260] sm:$0xff] }
 0x294   :  { %v1026_v54 = vadd.f32 %v1818_v46, %v1019_v44  ;;  %1742 = vmatpush3.bf16.msra.mxu1 %v1741_v33  ;;  %v1791_v44 = vpack.c.bf16 %v1284_v43, %v1283_v42  ;;  %v1286_v46 = vld [vmem:[%s2513_s5 + $0x268] sm:$0xff]  ;;  %v1241_v33 = vld [vmem:[%s2513_s5 + $0x100] sm:$0xff] }
 0x295   :  { %v2168_v58 = vmax.f32 %v1027_v50, 0.0  ;;  %1744 = vmatprep.subr.bf16.mxu1 %v1743_v41  ;;  %v1794_v47 = vpack.c.bf16 %v1286_v46, %v1285_v45  ;;  %v1745_v43 = vpack.c.bf16 %v1242_v34, %v1241_v33 }
 0x296   :  { %v2176_v63 = vmax.f32 %v1026_v54, 0.0  ;;  %1792 = vmatpush1.bf16.msra.mxu0 %v1791_v44  ;;  %v1289_v54 = vld [vmem:[%s2513_s5 + $0x280] sm:$0xff] }
 0x297   :  { %1145 = vrot.lane.b32.xlu0 %v2168_v58, %s1952_s24  ;;  %v1063_v0 = vrot.slane %v2168_v58, 1  ;;  %1793 = vmatprep.subr.bf16.mxu0 %v1951_v53  ;;  %v1079_v50 = vrot.slane %v2168_v58, 5  ;;  %v1067_v52 = vrot.slane %v2168_v58, 2  ;;  %v1075_v56 = vrot.slane %v2168_v58, 4 }
 0x298   :  { %v1035_v9 = vrot.slane %v2176_v63, 2  ;;  %v1039_v16 = vrot.slane %v2176_v63, 3  ;;  %v1043_v20 = vrot.slane %v2176_v63, 4  ;;  %v1047_v36 = vrot.slane %v2176_v63, 5 }
 0x299   :  { %1148 = vrot.lane.b32.xlu1 %v1063_v0, %s1953_s30  ;;  %v1031_v40 = vrot.slane %v2176_v63, 1  ;;  %v1800_v57 = vpack.c.bf16 %v1290_v55, %v1289_v54  ;;  %v1051_v61 = vrot.slane %v2176_v63, 6  ;;  %v1071_v1 = vrot.slane %v2168_v58, 3 }
 0x29a   :  { %1795 = vmatpush1.bf16.msra.mxu0 %v1794_v47  ;;  %v1083_v11 = vrot.slane %v2168_v58, 6  ;;  %v1087_v15 = vrot.slane %v2168_v58, 7  ;;  %v1243_v47 = vld [vmem:[%s2513_s5 + $0x110] sm:$0xff] }
 0x29b   :  { %1121 = vrot.lane.b32.xlu0 %v2176_v63, %s1948_s21  ;;  %s1961_s21 = smov 102   ;;  %1796 = vmatprep.subr.bf16.mxu0 %v1951_v53  ;;  %v1749_v54 = vpack.c.bf16 %v1244_v48, %v1243_v47  ;;  %v1256_v47 = vld [vmem:[%s2513_s5 + $0x178] sm:$0xff] }
 0x29d   :  { %1127 = vrot.lane.b32.xlu1 %v1035_v9, %s1954_s3 }
 0x29e   :  { %1798 = vmatpush1.bf16.msra.mxu0 %v1797_v51  ;;  %v1262_v51 = vld [vmem:[%s2513_s5 + $0x1a8] sm:$0xff] }
 0x29f   :  { %1130 = vrot.lane.b32.xlu0 %v1039_v16, %s1955_s4  ;;  %1799 = vmatprep.subr.bf16.mxu0 %v1951_v53  ;;  %s1973_s4 = smov 114  }
 0x2a1   :  { %1133 = vrot.lane.b32.xlu1 %v1043_v20, %s1941_s12  ;;  %s1956_s12 = smov 92  }
 0x2a2   :  { %1801 = vmatpush1.bf16.msra.mxu0 %v1800_v57  ;;  %v1245_v57 = vld [vmem:[%s2513_s5 + $0x120] sm:$0xff] }
 0x2a3   :  { %1036 = vrot.lane.b32.xlu0 %v1035_v9, %s1956_s12  ;;  %1802 = vmatprep.subr.bf16.mxu0 %v1951_v53  ;;  %v1298_v9 = vld [vmem:[%s2513_s5 + $0x2c8] sm:$0xff] }
 0x2a4   :  { %v1812_v10 = vpack.c.bf16 %v1298_v9, %v1297_v8 }
 0x2a5   :  { %1040 = vrot.lane.b32.xlu1 %v1039_v16, %s1957_s1  ;;  %s1963_s1 = smov 12  }
 0x2a6   :  { %1804 = vmatpush1.bf16.msra.mxu0 %v1803_v62 }
 0x2a7   :  { %1136 = vrot.lane.b32.xlu0 %v1047_v36, %s1958_s29  ;;  %s1964_s29 = smov 30   ;;  %1805 = vmatprep.subr.bf16.mxu0 %v1951_v53 }
 0x2a9   :  { %1124 = vrot.lane.b32.xlu1 %v1031_v40, %s1959_s11  ;;  %s1966_s11 = smov 58  }
 0x2aa   :  { %1807 = vmatpush1.bf16.msra.mxu0 %v1806_v4  ;;  %v1248_v4 = vld [vmem:[%s2513_s5 + $0x138] sm:$0xff] }
 0x2ab   :  { %1032 = vrot.lane.b32.xlu0 %v1031_v40, %s1960_s13  ;;  %s1967_s13 = smov 2   ;;  %1808 = vmatprep.subr.bf16.mxu0 %v1951_v53 }
 0x2ad   :  { %1044 = vrot.lane.b32.xlu1 %v1043_v20, %s1950_s23  ;;  %s1962_s23 = smov 22  }
 0x2ae   :  { %1810 = vmatpush1.bf16.msra.mxu0 %v1809_v7 }
 0x2af   :  { %1060 = vrot.lane.b32.xlu0 %v2168_v58, %s1947_s20  ;;  %1811 = vmatprep.subr.bf16.mxu0 %v1951_v53  ;;  %s1970_s20 = smov 66  }
 0x2b1   :  { %1048 = vrot.lane.b32.xlu1 %v1047_v36, %s1961_s21 }
 0x2b2   :  { %1813 = vmatpush1.bf16.msra.mxu0 %v1812_v10  ;;  %v1759_v10 = vpack.c.bf16 %v1266_v6, %v1265_v5 }
 0x2b3   :  { %1160 = vrot.lane.b32.xlu0 %v1079_v50, %s1962_s23  ;;  %1814 = vmatprep.subr.bf16.mxu0 %v1951_v53 }
 0x2b5   :  { %1151 = vrot.lane.b32.xlu1 %v1067_v52, %s1963_s1 }
 0x2b6   :  { %1816 = vmatpush1.bf16.msra.mxu0 %v1815_v14  ;;  %v1267_v14 = vld [vmem:[%s2513_s5 + $0x1d0] sm:$0xff] }
 0x2b7   :  { %1157 = vrot.lane.b32.xlu0 %v1075_v56, %s1949_s22 }
 0x2b9   :  { %1064 = vrot.lane.b32.xlu1 %v1063_v0, %s1964_s29  ;;  %v1055_v0 = vrot.slane %v2176_v63, 7  ;;  %s1976_s29 = smov 50  }
 0x2bb   :  { %1139 = vrot.lane.b32.xlu0 %v1051_v61, %s1965_s0 }
 0x2bd   :  { %1154 = vrot.lane.b32.xlu1 %v1071_v1, %s1966_s11  ;;  %s1977_s11 = smov [#allocation2]  }
 0x2bf   :  { %1142 = vrot.lane.b32.xlu0 %v1055_v0, %s1967_s13  ;;  %s1530_s13 = sshll.u32 %s1977_s11, 4  ;;  %s1531_s13 = int_to_ptr.vmem [resolvable:$true] %s1530_s13 }
 0x2c0   :  { %s1900_s2 = scalar_lea.vmem %s1531_s13, 32  ;;  %p1905_p1 = scmp.lt.s32.totalorder %s1531_s13, %s1531_s13 }
 0x2c1   :  { %1068 = vrot.lane.b32.xlu1 %v1067_v52, %s1968_s17  ;;  %p1901_p0 = scmp.ne.s32.totalorder %s1531_s13, %s1900_s2  ;;  %p1906_p2 = scmp.lt.s32.totalorder %s1900_s2, %s1900_s2 }
 0x2c3   :  { %1052 = vrot.lane.b32.xlu0 %v1051_v61, %s1969_s18  ;;  %v1264_v61 = vld [vmem:[%s2513_s5 + $0x1b8] sm:$0xff]  ;;  %p1907_p3 = por %p1906_p2, %p1905_p1 }
 0x2c4   :  { %v1755_v3 = vpack.c.bf16 %v1264_v61, %v1263_v60 }
 0x2c5   :  { %1072 = vrot.lane.b32.xlu1 %v1071_v1, %s1939_s10  ;;  %s1972_s10 = smov 86   ;;  %v1753_v1 = vpack.c.bf16 %v1246_v59, %v1245_v57  ;;  %p1908_p4 = pnand %p1907_p3, %p1901_p0 }
 0x2c7   :  { %1056 = vrot.lane.b32.xlu0 %v1055_v0, %s1970_s20  ;;  %v1247_v0 = vld [vmem:[%s2513_s5 + $0x130] sm:$0xff] }
 0x2c8   :  { %v1757_v8 = vpack.c.bf16 %v1248_v4, %v1247_v0 }
 0x2c9   :  { %1163 = vrot.lane.b32.xlu1 %v1083_v11, %s1971_s26 }
 0x2cb   :  { %1080 = vrot.lane.b32.xlu0 %v1079_v50, %s1972_s10  ;;  %v1261_v50 = vld [vmem:[%s2513_s5 + $0x1a0] sm:$0xff] }
 0x2cd   :  { %1166 = vrot.lane.b32.xlu1 %v1087_v15, %s1973_s4 }
 0x2cf   :  { %1076 = vrot.lane.b32.xlu0 %v1075_v56, %s1974_s27  ;;  %v1751_v56 = vpack.c.bf16 %v1262_v51, %v1261_v50 }
 0x2d1   :  { %1084 = vrot.lane.b32.xlu1 %v1083_v11, %s1975_s28  ;;  %v1249_v11 = vld [vmem:[%s2513_s5 + $0x140] sm:$0xff] }
 0x2d5   :  { %1088 = vrot.lane.b32.xlu1 %v1087_v15, %s1976_s29  ;;  %v1268_v15 = vld [vmem:[%s2513_s5 + $0x1d8] sm:$0xff] }
 0x309   :  { %v2344_v16 = vpop.permute.xlu0 %1145 }
 0x30b   :  { %v2346_v17 = vpop.permute.xlu1 %1148 }
 0x30c   :  { %v1177_v13 = vsel %vm1107_vm7, %v2344_v16, %v2346_v17  ;;  %v1251_v17 = vld [vmem:[%s2513_s5 + $0x150] sm:$0xff] }
 0x30d   :  { %v1122_v18 = vpop.permute.xlu0 %1121 }
 0x30f   :  { %v1128_v53 = vpop.permute.xlu1 %1127 }
 0x311   :  { %v1131_v19 = vpop.permute.xlu0 %1130 }
 0x312   :  { %v1171_v24 = vsel %vm1095_vm1, %v1128_v53, %v1131_v19 }
 0x313   :  { %v1134_v20 = vpop.permute.xlu1 %1133 }
 0x314   :  { %v1172_v27 = vsel %vm1097_vm3, %v1171_v24, %v1134_v20  ;;  %v1761_v20 = vpack.c.bf16 %v1250_v12, %v1249_v11 }
 0x315   :  { %v1037_v21 = vpop.permute.xlu0 %1036 }
 0x317   :  { %v1041_v22 = vpop.permute.xlu1 %1040 }
 0x318   :  { %v1096_v35 = vsel %vm1095_vm1, %v1037_v21, %v1041_v22  ;;  %v1763_v22 = vpack.c.bf16 %v1268_v15, %v1267_v14  ;;  %vm1308_vm1 = vcmask 785408  }
 0x319   :  { %v2348_v58 = vpop.permute.xlu0 %1136 }
 0x31a   :  { %v1173_v30 = vsel %vm1099_vm5, %v1172_v27, %v2348_v58 }
 0x31b   :  { %v1125_v23 = vpop.permute.xlu1 %1124  ;;  %v1191_v38 = vrot.slane %v1173_v30, 7 }
 0x31c   :  { %v1169_v25 = vsel %vm1091_vm2, %v1122_v18, %v1125_v23  ;;  %v1252_v23 = vld [vmem:[%s2513_s5 + $0x158] sm:$0xff] }
 0x31d   :  { %v1033_v26 = vpop.permute.xlu0 %1032  ;;  %v1170_v28 = vsel %vm1093_vm4, %v1169_v25, %v1128_v53  ;;  %v1269_v25 = vld [vmem:[%s2513_s5 + $0x1e0] sm:$0xff] }
 0x31e   :  { %v1092_v31 = vsel %vm1091_vm2, %v2176_v63, %v1033_v26  ;;  %v1190_v36 = vrot.slane %v1170_v28, 7  ;;  %v1260_v63 = vld [vmem:[%s2513_s5 + $0x198] sm:$0xff]  ;;  %v1270_v26 = vld [vmem:[%s2513_s5 + $0x1e8] sm:$0xff]  ;;  %vm1522_vm2 = vcmask 58368  }
 0x31f   :  { %v1045_v29 = vpop.permute.xlu1 %1044  ;;  %v1094_v39 = vsel %vm1093_vm4, %v1092_v31, %v1037_v21  ;;  %v1747_v46 = vpack.c.bf16 %v1260_v63, %v1259_v37  ;;  %v1765_v31 = vpack.c.bf16 %v1252_v23, %v1251_v17  ;;  %v1254_v37 = vld [vmem:[%s2513_s5 + $0x168] sm:$0xff]  ;;  %v1271_v63 = vld [vmem:[%s2513_s5 + $0x1f0] sm:$0xff] }
 0x320   :  { %v1098_v40 = vsel %vm1097_vm3, %v1096_v35, %v1045_v29  ;;  %v1203_v49 = vsel %vm1202_vm6, %v1094_v39, %v1190_v36  ;;  %v1767_v35 = vpack.c.bf16 %v1270_v26, %v1269_v25  ;;  %v1253_v36 = vld [vmem:[%s2513_s5 + $0x160] sm:$0xff] }
 0x321   :  { %v2356_v32 = vpop.permute.xlu0 %1060 }
 0x323   :  { %v2373_v41 = vpop.permute.xlu1 %1048 }
 0x324   :  { %v1100_v42 = vsel %vm1099_vm5, %v1098_v40, %v2373_v41  ;;  %v1769_v40 = vpack.c.bf16 %v1254_v37, %v1253_v36 }
 0x325   :  { %v2377_v44 = vpop.permute.xlu0 %1160  ;;  %v1204_v45 = vsel %vm1202_vm6, %v1100_v42, %v1191_v38  ;;  %v1272_v38 = vld [vmem:[%s2513_s5 + $0x1f8] sm:$0xff] }
 0x326   :  { %1376 = vmatprep.mubr.f32.mxu1 %v1204_v45  ;;  %v1771_v45 = vpack.c.bf16 %v1272_v38, %v1271_v63 }
 0x327   :  { %1377 = vmatmul.mubr.f32.vlgmr.msra.gmra.mrb[2].mxu1 %v1203_v49  ;;  %v1152_v52 = vpop.permute.xlu1 %1151 }
 0x328   :  { %1746 = vmatpush3.bf16.msra.mxu1 %v1745_v43  ;;  %v1178_v18 = vsel %vm1109_vm8, %v1177_v13, %v1152_v52 }
 0x329   :  { %v2393_v55 = vpop.permute.xlu0 %1157  ;;  %1748 = vmatprep.subr.bf16.mxu1 %v1747_v46  ;;  %v1255_v46 = vld [vmem:[%s2513_s5 + $0x170] sm:$0xff] }
 0x32b   :  { %v1065_v62 = vpop.permute.xlu1 %1064 }
 0x32c   :  { %1750 = vmatpush3.bf16.msra.mxu1 %v1749_v54  ;;  %v1108_v24 = vsel %vm1107_vm7, %v2356_v32, %v1065_v62 }
 0x32d   :  { %v1140_v2 = vpop.permute.xlu0 %1139  ;;  %1752 = vmatprep.subr.bf16.mxu1 %v1751_v56 }
 0x32e   :  { %v1174_v42 = vsel %vm1101_vm10, %v2348_v58, %v1140_v2  ;;  %v1773_v58 = vpack.c.bf16 %v1256_v47, %v1255_v46 }
 0x32f   :  { %v2419_v7 = vpop.permute.xlu1 %1154 }
 0x330   :  { %1754 = vmatpush3.bf16.msra.mxu1 %v1753_v1  ;;  %v1179_v19 = vsel %vm1111_vm9, %v1178_v18, %v2419_v7  ;;  %v1180_v56 = vsel %vm1113_vm13, %v2419_v7, %v2393_v55 }
 0x331   :  { %v1143_v9 = vpop.permute.xlu0 %1142  ;;  %1756 = vmatprep.subr.bf16.mxu1 %v1755_v3  ;;  %v1193_v27 = vrot.slane %v1179_v19, 7 }
 0x332   :  { %v1175_v48 = vsel %vm1103_vm11, %v1174_v42, %v1143_v9  ;;  %v1559_v9 = vld [vmem:[%s2514_s6] ss:$0 sm:$0xff] }
 0x333   :  { %v1069_v53 = vpop.permute.xlu1 %1068  ;;  %v1176_v52 = vsel %vm1105_vm12, %v1175_v48, %v2344_v16  ;;  %v1181_v16 = vsel %vm1115_vm0, %v1180_v56, %v2377_v44 }
 0x334   :  { %1758 = vmatpush3.bf16.msra.mxu1 %v1757_v8  ;;  %v1110_v28 = vsel %vm1109_vm8, %v1108_v24, %v1069_v53  ;;  %v1192_v60 = vrot.slane %v1176_v52, 7  ;;  %v1194_v0 = vrot.slane %v1181_v16, 7 }
 0x335   :  { %v1053_v21 = vpop.permute.xlu0 %1052  ;;  %1760 = vmatprep.subr.bf16.mxu1 %v1759_v10 }
 0x336   :  { %v1102_v49 = vsel %vm1101_vm10, %v2373_v41, %v1053_v21 }
 0x337   :  { %v1073_v29 = vpop.permute.xlu1 %1072 }
 0x338   :  { %1762 = vmatpush3.bf16.msra.mxu1 %v1761_v20  ;;  %v1112_v30 = vsel %vm1111_vm9, %v1110_v28, %v1073_v29 }
 0x339   :  { %v1057_v33 = vpop.permute.xlu0 %1056  ;;  %1764 = vmatprep.subr.bf16.mxu1 %v1763_v22  ;;  %v1206_v34 = vsel %vm1202_vm6, %v1112_v30, %v1193_v27 }
 0x33a   :  { %1446 = vmatprep.mubr.f32.mxu1 %v1206_v34  ;;  %v1104_v51 = vsel %vm1103_vm11, %v1102_v49, %v1057_v33 }
 0x33b   :  { %v1164_v39 = vpop.permute.xlu1 %1163  ;;  %v1106_v57 = vsel %vm1105_vm12, %v1104_v51, %v2356_v32 }
 0x33c   :  { %1766 = vmatpush3.bf16.msra.mxu1 %v1765_v31  ;;  %v1182_v41 = vsel %vm1117_vm14, %v2377_v44, %v1164_v39  ;;  %v1205_v1 = vsel %vm1202_vm6, %v1106_v57, %v1192_v60 }
 0x33d   :  { %v1081_v43 = vpop.permute.xlu0 %1080  ;;  %1768 = vmatprep.subr.bf16.mxu1 %v1767_v35 }
 0x33f   :  { %v1167_v50 = vpop.permute.xlu1 %1166 }
 0x340   :  { %1770 = vmatpush3.bf16.msra.mxu1 %v1769_v40  ;;  %v1183_v61 = vsel %vm1119_vm15, %v1182_v41, %v1167_v50 }
 0x341   :  { %v1077_v54 = vpop.permute.xlu0 %1076  ;;  %1772 = vmatprep.subr.bf16.mxu1 %v1771_v45  ;;  %v1195_v2 = vrot.slane %v1183_v61, 7 }
 0x342   :  { %v1114_v62 = vsel %vm1113_vm13, %v1073_v29, %v1077_v54 }
 0x343   :  { %v1085_v59 = vpop.permute.xlu1 %1084  ;;  %v1116_v3 = vsel %vm1115_vm0, %v1114_v62, %v1081_v43 }
 0x344   :  { %1774 = vmatpush3.bf16.msra.mxu1 %v1773_v58  ;;  %v1118_v55 = vsel %vm1117_vm14, %v1081_v43, %v1085_v59  ;;  %v1207_v6 = vsel %vm1202_vm6, %v1116_v3, %v1194_v0 }
 0x347   :  { %1447 = vmatmul.mubr.f32.vlgmr.msra.gmra.mrb[4].mxu1 %v1205_v1  ;;  %v1089_v32 = vpop.permute.xlu1 %1088 }
 0x348   :  { %v1120_v4 = vsel %vm1119_vm15, %v1118_v55, %v1089_v32 }
 0x349   :  { %v1208_v5 = vsel %vm1202_vm6, %v1120_v4, %v1195_v2 }
 0x34a   :  { %1560 = vmatprep.mubr.msk.f32.mxu0 %vm1308_vm1, %v1208_v5 }
 0x34b   :  { %1517 = vmatmul.mubr.f32.vlgmr.msra.gmra.mrb[2].mxu0 %v1207_v6 }
 0x3fa   :  { %v1623_v7 = vpop.f32.mrb[2].mxu1 }
 0x3fb   :  { %v1624_v44 = vpop.f32.mrb[3].mxu1 }
 0x3fc   :  { %v1625_v8 = vadd.f32 %v1624_v44, %v1623_v7 }
 0x3fe   :  { %v1379_v12 = vadd.f32 %v1625_v8, %v1559_v9 }
 0x41a   :  { %v1658_v10 = vpop.f32.mrb[4].mxu1 }
 0x41b   :  { %v1659_v11 = vpop.f32.mrb[5].mxu1 }
 0x41c   :  { %v1660_v13 = vadd.f32 %v1659_v11, %v1658_v10 }
 0x41e   :  { %v1449_v14 = vadd.f32 %v1660_v13, %v1379_v12  ;;  %v1518_v15 = vpop.f32.mrb[2].mxu0 }
 0x41f   :  { %v1520_v18 = vpop.f32.mrb[3].mxu0 }
 0x420   :  { %v1519_v53 = vadd.f32 %v1518_v15, %v1449_v14 }
 0x422   :  { %1523 = vst.msk [vmem:[#allocation2] sm:$0x3] %vm1522_vm2, %v1519_v53 }
 0x423   :  { %1911 = shalt.err (!%p1908_p4)
}
 0x424   :  { %s1912_s15 = scalar_lea.hbm %s2515_s7, 32 }
 0x425   :  { %p1913_p5 = scmp.ne.s32.totalorder %s2515_s7, %s1912_s15  ;;  %p1916_p6 = scmp.lt.u32.totalorder %s1912_s15, %s2515_s7 }
 0x427   :  { %p1918_p7 = pnand %p1916_p6, %p1913_p5 }
 0x429   :  { %1921 = shalt.err (!%p1918_p7)
}
 0x42a   :  { %1533 = dma.vmem_to_hbm [thread:$0]  %s1531_s13, 32, %s2515_s7, [#allocation3]  }
 0x42b   :  { %1922 = dma.done.wait [#allocation3], 32  }
 0x42c   :  { %1923 = vsyncadd [#allocation3], 4294967264 }
 0x42d   :  { %1537 = vsyncpa [#allocation3], 1 }

</bundles_post_ra>
